<compile_context>
chip_gen: v7x
topology: tpu7x:2x2x1
jax: 0.10.0
libtpu: 0.0.40
codegen_flags: <defaults>
</compile_context>

<pallas_src>
import math

import jax
import jax.numpy as jnp
from jax import lax
from jax.experimental import pallas as pl
from jax.experimental.pallas import tpu as pltpu  # noqa: F401  (not needed at these shapes)

N_EMBD = 16
HEAD_SIZE = 16
BLOCK_SIZE = 7     # max sequence length (size of the registered tril buffer)
DROPOUT = 0.2      # unused at inference (eval-mode identity)


def head_kernel(x_ref, wq_ref, wk_ref, wv_ref, out_ref, att_ref):
    # x_ref: (B*T, C); w*_ref: (C, H); out_ref: (B, T, H); att_ref: (B, T, T)
    B, T, H = out_ref.shape
    x = x_ref[...]                                               # (B*T, C)

    # Flattened projections: one (B*T, C) x (C, H) MXU pass per weight, f32 accumulation.
    q_all = jnp.dot(x, wq_ref[...], preferred_element_type=jnp.float32)
    k_all = jnp.dot(x, wk_ref[...], preferred_element_type=jnp.float32)
    v_all = jnp.dot(x, wv_ref[...], preferred_element_type=jnp.float32)

    # Causal mask (== tril[:T, :T]) built once per invocation with 2-D iota.
    row = lax.broadcasted_iota(jnp.int32, (T, T), 0)
    col = lax.broadcasted_iota(jnp.int32, (T, T), 1)
    causal = row >= col
    scale = H ** -0.5                              # k.shape[-1] ** -0.5 in the module

    # Attention unrolled over the tiny static batch axis (B=2) — no grid, no per-step cost.
    for b in range(B):
        q = q_all[b * T:(b + 1) * T, :]                          # (T, H)
        k = k_all[b * T:(b + 1) * T, :]
        v = v_all[b * T:(b + 1) * T, :]

        # q @ k^T without materializing k^T: contract both operands on the feature axis.
        scores = lax.dot_general(
            q, k, (((1,), (1,)), ((), ())),
            preferred_element_type=jnp.float32) * scale          # (T, T)
        scores = jnp.where(causal, scores, -jnp.inf)

        # Numerically-stable softmax over the key axis (diagonal is always unmasked,
        # so the row max is finite). Exact division keeps the 1e-5 tolerance.
        m = jnp.max(scores, axis=-1, keepdims=True)
        p = jnp.exp(scores - m)
        wei = p / jnp.sum(p, axis=-1, keepdims=True)

        att_ref[b] = wei.astype(att_ref.dtype)      # pre-dropout attention weights (clone)
        # Dropout in eval mode == identity.
        out = jnp.dot(wei, v, preferred_element_type=jnp.float32)
        out_ref[b] = out.astype(out_ref.dtype)


def head_forward(x, wq, wk, wv):
    """x: (B, T, n_embd) f32; wq/wk/wv: (n_embd, head_size) -> (out, att_wei)."""
    B, T, C = x.shape
    assert C == N_EMBD and T <= BLOCK_SIZE
    H = wq.shape[1]

    # Layout plumbing only: flatten batch*seq so the QKV projections are single MXU passes.
    x_flat = x.reshape(B * T, C)

    out, att = pl.pallas_call(
        head_kernel,
        # Single invocation (grid == ()): the whole problem fits in a couple of vregs,
        # so per-grid-step overhead would dominate any "parallelism" at these shapes.
        out_shape=(
            jax.ShapeDtypeStruct((B, T, H), x.dtype),
            jax.ShapeDtypeStruct((B, T, T), jnp.float32),
        ),
        in_specs=[
            # Whole-array blocks: last two block dims equal the full array dims,
            # so the (8,128) divisibility rule is satisfied.
            pl.BlockSpec((B * T, C), lambda: (0, 0)),
            pl.BlockSpec((C, H), lambda: (0, 0)),
            pl.BlockSpec((C, H), lambda: (0, 0)),
            pl.BlockSpec((C, H), lambda: (0, 0)),
        ],
        out_specs=(
            pl.BlockSpec((B, T, H), lambda: (0, 0, 0)),
            pl.BlockSpec((B, T, T), lambda: (0, 0, 0)),
        ),
    )(x_flat, wq, wk, wv)
    return out, att


def init_params(key):
    """Deterministic init mirroring nn.Linear(bias=False): U[-1/sqrt(fan_in), +]."""
    kq, kk, kv = jax.random.split(key, 3)
    bound = 1.0 / math.sqrt(N_EMBD)
    # Stored as (in, out) so the kernel computes x @ W (PyTorch stores (out, in) and
    # computes x @ W.T — mathematically identical).
    wq = jax.random.uniform(kq, (N_EMBD, HEAD_SIZE), jnp.float32, -bound, bound)
    wk = jax.random.uniform(kk, (N_EMBD, HEAD_SIZE), jnp.float32, -bound, bound)
    wv = jax.random.uniform(kv, (N_EMBD, HEAD_SIZE), jnp.float32, -bound, bound)
    return wq, wk, wv


def head_ref(x, wq, wk, wv):
    """Pure-JAX reference matching the PyTorch Head.forward (eval mode)."""
    q = x @ wq
    k = x @ wk
    v = x @ wv
    wei = (q @ jnp.swapaxes(k, -2, -1)) * (k.shape[-1] ** -0.5)
    T = x.shape[1]
    mask = jnp.tril(jnp.ones((T, T), dtype=bool))
    wei = jnp.where(mask, wei, -jnp.inf)
    wei = jax.nn.softmax(wei, axis=-1)
    return wei @ v, wei


if __name__ == "__main__":
    key = jax.random.PRNGKey(0)
    kx, kp = jax.random.split(key)

    B, T = 2, BLOCK_SIZE                     # (2, 7, 16) like the module's input
    x = jax.random.normal(kx, (B, T, N_EMBD), jnp.float32)
    wq, wk, wv = init_params(kp)

    out, att = head_forward(x, wq, wk, wv)
    out = jax.block_until_ready(out)
    att = jax.block_until_ready(att)

    ref_out, ref_att = head_ref(x, wq, wk, wv)
    assert out.shape == (B, T, HEAD_SIZE)
    assert att.shape == (B, T, T)
    assert jnp.allclose(out, ref_out, atol=1e-5, rtol=1e-5)
    assert jnp.allclose(att, ref_att, atol=1e-5, rtol=1e-5)

    print("KERNEL_OK")
</pallas_src>

<mosaic_0001>
module attributes {stable_mosaic.version = 11 : i64} {
  func.func @head_kernel(%arg0: memref<14x16xf32, #tpu.memory_space<vmem>>, %arg1: memref<16x16xf32, #tpu.memory_space<vmem>>, %arg2: memref<16x16xf32, #tpu.memory_space<vmem>>, %arg3: memref<16x16xf32, #tpu.memory_space<vmem>>, %arg4: memref<2x7x16xf32, #tpu.memory_space<vmem>>, %arg5: memref<2x7x7xf32, #tpu.memory_space<vmem>>) attributes {dimension_semantics = [], scalar_prefetch = 0 : i64, scratch_operands = 0 : i64, tpu.core_type = #tpu.core_type<tc>} {
    %c0 = arith.constant 0 : index
    %c0_0 = arith.constant 0 : index
    %0 = vector.load %arg0[%c0, %c0_0] : memref<14x16xf32, #tpu.memory_space<vmem>>, vector<14x16xf32>
    %c0_1 = arith.constant 0 : index
    %c0_2 = arith.constant 0 : index
    %1 = vector.load %arg1[%c0_1, %c0_2] : memref<16x16xf32, #tpu.memory_space<vmem>>, vector<16x16xf32>
    %cst = arith.constant dense<0.000000e+00> : vector<14x16xf32>
    %2 = tpu.matmul %0, %1, %cst {dimension_numbers = #tpu.dot_dimension_numbers<[1], [0], [0], [1], [0, 0, 1, 1], [], []>} : vector<14x16xf32>, vector<16x16xf32>, vector<14x16xf32> -> vector<14x16xf32>
    %c0_3 = arith.constant 0 : index
    %c0_4 = arith.constant 0 : index
    %3 = vector.load %arg2[%c0_3, %c0_4] : memref<16x16xf32, #tpu.memory_space<vmem>>, vector<16x16xf32>
    %cst_5 = arith.constant dense<0.000000e+00> : vector<14x16xf32>
    %4 = tpu.matmul %0, %3, %cst_5 {dimension_numbers = #tpu.dot_dimension_numbers<[1], [0], [0], [1], [0, 0, 1, 1], [], []>} : vector<14x16xf32>, vector<16x16xf32>, vector<14x16xf32> -> vector<14x16xf32>
    %c0_6 = arith.constant 0 : index
    %c0_7 = arith.constant 0 : index
    %5 = vector.load %arg3[%c0_6, %c0_7] : memref<16x16xf32, #tpu.memory_space<vmem>>, vector<16x16xf32>
    %cst_8 = arith.constant dense<0.000000e+00> : vector<14x16xf32>
    %6 = tpu.matmul %0, %5, %cst_8 {dimension_numbers = #tpu.dot_dimension_numbers<[1], [0], [0], [1], [0, 0, 1, 1], [], []>} : vector<14x16xf32>, vector<16x16xf32>, vector<14x16xf32> -> vector<14x16xf32>
    %7 = tpu.iota {dimensions = array<i32: 0>} : vector<7x7xi32>
    %8 = tpu.iota {dimensions = array<i32: 1>} : vector<7x7xi32>
    %9 = arith.cmpi sge, %7, %8 : vector<7x7xi32>
    %10 = vector.extract_strided_slice %2 {offsets = [0, 0], sizes = [7, 16], strides = [1, 1]} : vector<14x16xf32> to vector<7x16xf32>
    %11 = vector.extract_strided_slice %4 {offsets = [0, 0], sizes = [7, 16], strides = [1, 1]} : vector<14x16xf32> to vector<7x16xf32>
    %12 = vector.extract_strided_slice %6 {offsets = [0, 0], sizes = [7, 16], strides = [1, 1]} : vector<14x16xf32> to vector<7x16xf32>
    %cst_9 = arith.constant dense<0.000000e+00> : vector<7x7xf32>
    %13 = tpu.matmul %10, %11, %cst_9 {dimension_numbers = #tpu.dot_dimension_numbers<[1], [1], [0], [0], [0, 0, 1, 0], [], []>} : vector<7x16xf32>, vector<7x16xf32>, vector<7x7xf32> -> vector<7x7xf32>
    %cst_10 = arith.constant 2.500000e-01 : f32
    %14 = vector.broadcast %cst_10 : f32 to vector<7x7xf32>
    %15 = arith.mulf %13, %14 : vector<7x7xf32>
    %cst_11 = arith.constant 0xFF800000 : f32
    %16 = vector.broadcast %cst_11 : f32 to vector<7x7xf32>
    %17 = arith.select %9, %15, %16 : vector<7x7xi1>, vector<7x7xf32>
    %cst_12 = arith.constant dense<0xFF800000> : vector<7xf32>
    %18 = vector.multi_reduction <maximumf>, %17, %cst_12 [1] : vector<7x7xf32> to vector<7xf32>
    %19 = vector.shape_cast %18 : vector<7xf32> to vector<7x1xf32>
    %20 = vector.broadcast %19 : vector<7x1xf32> to vector<7x7xf32>
    %21 = arith.subf %17, %20 : vector<7x7xf32>
    %22 = math.exp %21 : vector<7x7xf32>
    %cst_13 = arith.constant dense<0.000000e+00> : vector<7xf32>
    %23 = vector.multi_reduction <add>, %22, %cst_13 [1] : vector<7x7xf32> to vector<7xf32>
    %24 = vector.shape_cast %23 : vector<7xf32> to vector<7x1xf32>
    %25 = vector.broadcast %24 : vector<7x1xf32> to vector<7x7xf32>
    %26 = arith.divf %22, %25 : vector<7x7xf32>
    %c0_14 = arith.constant 0 : index
    %c0_15 = arith.constant 0 : index
    %c0_16 = arith.constant 0 : index
    %27 = vector.load %arg5[%c0_14, %c0_15, %c0_16] : memref<2x7x7xf32, #tpu.memory_space<vmem>>, vector<1x7x7xf32>
    %28 = vector.shape_cast %27 : vector<1x7x7xf32> to vector<7x7xf32>
    %29 = vector.shape_cast %26 : vector<7x7xf32> to vector<1x7x7xf32>
    tpu.vector_store %arg5[%c0_14, %c0_15, %c0_16], %29 {strides = array<i32>} : memref<2x7x7xf32, #tpu.memory_space<vmem>>, vector<1x7x7xf32>,
    %cst_17 = arith.constant dense<0.000000e+00> : vector<7x16xf32>
    %30 = tpu.matmul %26, %12, %cst_17 {dimension_numbers = #tpu.dot_dimension_numbers<[1], [0], [0], [1], [0, 0, 1, 1], [], []>} : vector<7x7xf32>, vector<7x16xf32>, vector<7x16xf32> -> vector<7x16xf32>
    %c0_18 = arith.constant 0 : index
    %c0_19 = arith.constant 0 : index
    %c0_20 = arith.constant 0 : index
    %31 = vector.load %arg4[%c0_18, %c0_19, %c0_20] : memref<2x7x16xf32, #tpu.memory_space<vmem>>, vector<1x7x16xf32>
    %32 = vector.shape_cast %31 : vector<1x7x16xf32> to vector<7x16xf32>
    %33 = vector.shape_cast %30 : vector<7x16xf32> to vector<1x7x16xf32>
    tpu.vector_store %arg4[%c0_18, %c0_19, %c0_20], %33 {strides = array<i32>} : memref<2x7x16xf32, #tpu.memory_space<vmem>>, vector<1x7x16xf32>,
    %34 = vector.extract_strided_slice %2 {offsets = [7, 0], sizes = [7, 16], strides = [1, 1]} : vector<14x16xf32> to vector<7x16xf32>
    %35 = vector.extract_strided_slice %4 {offsets = [7, 0], sizes = [7, 16], strides = [1, 1]} : vector<14x16xf32> to vector<7x16xf32>
    %36 = vector.extract_strided_slice %6 {offsets = [7, 0], sizes = [7, 16], strides = [1, 1]} : vector<14x16xf32> to vector<7x16xf32>
    %cst_21 = arith.constant dense<0.000000e+00> : vector<7x7xf32>
    %37 = tpu.matmul %34, %35, %cst_21 {dimension_numbers = #tpu.dot_dimension_numbers<[1], [1], [0], [0], [0, 0, 1, 0], [], []>} : vector<7x16xf32>, vector<7x16xf32>, vector<7x7xf32> -> vector<7x7xf32>
    %cst_22 = arith.constant 2.500000e-01 : f32
    %38 = vector.broadcast %cst_22 : f32 to vector<7x7xf32>
    %39 = arith.mulf %37, %38 : vector<7x7xf32>
    %cst_23 = arith.constant 0xFF800000 : f32
    %40 = vector.broadcast %cst_23 : f32 to vector<7x7xf32>
    %41 = arith.select %9, %39, %40 : vector<7x7xi1>, vector<7x7xf32>
    %cst_24 = arith.constant dense<0xFF800000> : vector<7xf32>
    %42 = vector.multi_reduction <maximumf>, %41, %cst_24 [1] : vector<7x7xf32> to vector<7xf32>
    %43 = vector.shape_cast %42 : vector<7xf32> to vector<7x1xf32>
    %44 = vector.broadcast %43 : vector<7x1xf32> to vector<7x7xf32>
    %45 = arith.subf %41, %44 : vector<7x7xf32>
    %46 = math.exp %45 : vector<7x7xf32>
    %cst_25 = arith.constant dense<0.000000e+00> : vector<7xf32>
    %47 = vector.multi_reduction <add>, %46, %cst_25 [1] : vector<7x7xf32> to vector<7xf32>
    %48 = vector.shape_cast %47 : vector<7xf32> to vector<7x1xf32>
    %49 = vector.broadcast %48 : vector<7x1xf32> to vector<7x7xf32>
    %50 = arith.divf %46, %49 : vector<7x7xf32>
    %c1 = arith.constant 1 : index
    %c0_26 = arith.constant 0 : index
    %c0_27 = arith.constant 0 : index
    %51 = vector.load %arg5[%c1, %c0_26, %c0_27] : memref<2x7x7xf32, #tpu.memory_space<vmem>>, vector<1x7x7xf32>
    %52 = vector.shape_cast %51 : vector<1x7x7xf32> to vector<7x7xf32>
    %53 = vector.shape_cast %50 : vector<7x7xf32> to vector<1x7x7xf32>
    tpu.vector_store %arg5[%c1, %c0_26, %c0_27], %53 {strides = array<i32>} : memref<2x7x7xf32, #tpu.memory_space<vmem>>, vector<1x7x7xf32>,
    %cst_28 = arith.constant dense<0.000000e+00> : vector<7x16xf32>
    %54 = tpu.matmul %50, %36, %cst_28 {dimension_numbers = #tpu.dot_dimension_numbers<[1], [0], [0], [1], [0, 0, 1, 1], [], []>} : vector<7x7xf32>, vector<7x16xf32>, vector<7x16xf32> -> vector<7x16xf32>
    %c1_29 = arith.constant 1 : index
    %c0_30 = arith.constant 0 : index
    %c0_31 = arith.constant 0 : index
    %55 = vector.load %arg4[%c1_29, %c0_30, %c0_31] : memref<2x7x16xf32, #tpu.memory_space<vmem>>, vector<1x7x16xf32>
    %56 = vector.shape_cast %55 : vector<1x7x16xf32> to vector<7x16xf32>
    %57 = vector.shape_cast %54 : vector<7x16xf32> to vector<1x7x16xf32>
    tpu.vector_store %arg4[%c1_29, %c0_30, %c0_31], %57 {strides = array<i32>} : memref<2x7x16xf32, #tpu.memory_space<vmem>>, vector<1x7x16xf32>,
    return
  }
}

</mosaic_0001>

<bundles_post_ra>
// kernel: tpu_custom_call.1
= control target key start
LH: loop header
LB: loop body
LE: loop exit
PB: predicated region body
PF: predicated region fallthrough
CT: control target
= control target key end

     0   :  { %11 = vsyncpa [#allocation3], 0  ;;  %s1036_s0 = inlined_call_operand.hbm [shape: f32[14,16], index: 0, kind: input, shape index: {}]   ;;  %s1037_s1 = inlined_call_operand.hbm [shape: f32[16,16], index: 1, kind: input, shape index: {}]   ;;  %s1038_s2 = inlined_call_operand.hbm [shape: f32[16,16], index: 2, kind: input, shape index: {}]   ;;  %s1039_s3 = inlined_call_operand.hbm [shape: f32[16,16], index: 3, kind: input, shape index: {}]   ;;  %s1040_s4 = inlined_call_operand.vmem [shape: f32[2,7,16], index: 4, kind: output, shape index: {0}]   ;;  %s1041_s5 = inlined_call_operand.vmem [shape: f32[2,7,7], index: 5, kind: output, shape index: {1}]  }
   0x1   :  { %12 = vsyncpa [#allocation5], 0 }
   0x2   :  { %13 = vsyncpa [#allocation8], 0  ;;  %s879_s18 = smov [#allocation4]   ;;  %s880_s20 = smov [#allocation2]  }
   0x3   :  { %s31_s19 = sshll.u32 %s879_s18, 4  ;;  %s19_s21 = sshll.u32 %s880_s20, 4  ;;  %s32_s19 = int_to_ptr.vmem [resolvable:$true] %s31_s19  ;;  %s917_s21 = int_to_ptr.vmem [resolvable:$true] %s19_s21 }
   0x4   :  { %s785_s24 = scalar_lea.hbm %s1037_s1, 256 }
   0x5   :  { %p786_p0 = scmp.ne.s32.totalorder %s1037_s1, %s785_s24  ;;  %p789_p1 = scmp.lt.u32.totalorder %s785_s24, %s1037_s1 }
   0x7   :  { %p791_p2 = pnand %p789_p1, %p786_p0 }
   0x9   :  { %794 = shalt.err (!%p791_p2)
}
   0xa   :  { %s795_s29 = scalar_lea.vmem %s32_s19, 256  ;;  %p800_p4 = scmp.lt.s32.totalorder %s32_s19, %s32_s19 }
   0xb   :  { %p796_p3 = scmp.ne.s32.totalorder %s32_s19, %s795_s29  ;;  %p801_p5 = scmp.lt.s32.totalorder %s795_s29, %s795_s29 }
   0xd   :  { %p802_p6 = por %p801_p5, %p800_p4 }
   0xf   :  { %p803_p7 = pnand %p802_p6, %p796_p3 }
  0x11   :  { %806 = shalt.err (!%p803_p7)
}
  0x12   :  { %s881_s30 = smov 128   ;;  %s882_s6 = smov 8  }
  0x13   :  { %37 = dma.hbm_to_vmem [thread:$0]  %s1037_s1, 256, %s32_s19, [#allocation5], %s881_s30, %s881_s30, %s882_s6  }
  0x14   :  { %s807_s11 = scalar_lea.hbm %s1036_s0, 256 }
  0x15   :  { %p808_p8 = scmp.ne.s32.totalorder %s1036_s0, %s807_s11  ;;  %p811_p9 = scmp.lt.u32.totalorder %s807_s11, %s1036_s0 }
  0x17   :  { %p813_p10 = pnand %p811_p9, %p808_p8 }
  0x19   :  { %816 = shalt.err (!%p813_p10)
}
  0x1a   :  { %s817_s16 = scalar_lea.vmem %s917_s21, 256  ;;  %p822_p12 = scmp.lt.s32.totalorder %s917_s21, %s917_s21 }
  0x1b   :  { %p818_p11 = scmp.ne.s32.totalorder %s917_s21, %s817_s16  ;;  %p823_p13 = scmp.lt.s32.totalorder %s817_s16, %s817_s16 }
  0x1d   :  { %p824_p0 = por %p823_p13, %p822_p12 }
  0x1f   :  { %p825_p1 = pnand %p824_p0, %p818_p11 }
  0x21   :  { %828 = shalt.err (!%p825_p1)
}
  0x22   :  { %25 = dma.hbm_to_vmem [thread:$0]  %s1036_s0, 256, %s917_s21, [#allocation3], %s881_s30, %s881_s30, %s882_s6  }
  0x23   :  { %s883_s18 = smov [#allocation6]   ;;  %s884_s20 = smov [#allocation7]  }
  0x24   :  { %s43_s19 = sshll.u32 %s883_s18, 4  ;;  %s55_s22 = sshll.u32 %s884_s20, 4  ;;  %s44_s19 = int_to_ptr.vmem [resolvable:$true] %s43_s19  ;;  %s954_s22 = int_to_ptr.vmem [resolvable:$true] %s55_s22 }
  0x25   :  { %s829_s25 = scalar_lea.hbm %s1038_s2, 256 }
  0x26   :  { %p830_p2 = scmp.ne.s32.totalorder %s1038_s2, %s829_s25  ;;  %p833_p3 = scmp.lt.u32.totalorder %s829_s25, %s1038_s2 }
  0x28   :  { %p835_p4 = pnand %p833_p3, %p830_p2 }
  0x2a   :  { %838 = shalt.err (!%p835_p4)
}
  0x2b   :  { %s839_s0 = scalar_lea.vmem %s44_s19, 256  ;;  %p844_p6 = scmp.lt.s32.totalorder %s44_s19, %s44_s19 }
  0x2c   :  { %p840_p5 = scmp.ne.s32.totalorder %s44_s19, %s839_s0  ;;  %p845_p7 = scmp.lt.s32.totalorder %s839_s0, %s839_s0 }
  0x2e   :  { %p846_p8 = por %p845_p7, %p844_p6 }
  0x30   :  { %p847_p9 = pnand %p846_p8, %p840_p5 }
  0x32   :  { %850 = shalt.err (!%p847_p9)
}
  0x33   :  { %49 = dma.hbm_to_vmem [thread:$0]  %s1038_s2, 256, %s44_s19, [#allocation5], %s881_s30, %s881_s30, %s882_s6  }
  0x34   :  { %s851_s10 = scalar_lea.hbm %s1039_s3, 256 }
  0x35   :  { %p852_p10 = scmp.ne.s32.totalorder %s1039_s3, %s851_s10  ;;  %p855_p11 = scmp.lt.u32.totalorder %s851_s10, %s1039_s3 }
  0x37   :  { %p857_p12 = pnand %p855_p11, %p852_p10 }
  0x39   :  { %860 = shalt.err (!%p857_p12)
}
  0x3a   :  { %s861_s15 = scalar_lea.vmem %s954_s22, 256  ;;  %p866_p0 = scmp.lt.s32.totalorder %s954_s22, %s954_s22 }
  0x3b   :  { %p862_p13 = scmp.ne.s32.totalorder %s954_s22, %s861_s15  ;;  %p867_p1 = scmp.lt.s32.totalorder %s861_s15, %s861_s15 }
  0x3d   :  { %p868_p2 = por %p867_p1, %p866_p0 }
  0x3f   :  { %p869_p3 = pnand %p868_p2, %p862_p13 }
  0x41   :  { %872 = shalt.err (!%p869_p3)
}
  0x42   :  { %61 = dma.hbm_to_vmem [thread:$0]  %s1039_s3, 256, %s954_s22, [#allocation8], %s881_s30, %s881_s30, %s882_s6  }
  0x43   :  { %873 = dma.done.wait [#allocation3], 256  }
  0x44   :  { %874 = vsyncadd [#allocation3], 4294967040 }
  0x45   :  { %875 = dma.done.wait [#allocation5], 512  }
  0x46   :  { %876 = vsyncadd [#allocation5], 4294966784 }
  0x47   :  { %877 = dma.done.wait [#allocation8], 256  }
  0x48   :  { %878 = vsyncadd [#allocation8], 4294967040  ;;  %vm78_vm0 = vcmask 130048   ;;  %v160_v0 = vld [vmem:[#allocation6] sm:$0xff]  ;;  %v161_v1 = vld [vmem:[#allocation6 + $0x8] sm:$0xff]  ;;  %v885_v8 = vmov 0.0   ;;  %v314_v22 = vlaneseq }
  0x49   :  { %v76_v2 = vld [vmem:[#allocation4] sm:$0xff]  ;;  %v761_v3 = vpack.c.bf16 %v161_v1, %v160_v0  ;;  %v77_v4 = vld [vmem:[#allocation4 + $0x8] sm:$0xff]  ;;  %v74_v5 = vld [vmem:[#allocation2] sm:$0xff]  ;;  %vm886_vm1 = vmmov 0   ;;  %vm491_vm2 = vcmask 1040384   ;;  %vm397_vm4 = vcmask 55296  }
  0x4a   :  { %v757_v6 = vpack.c.bf16 %v77_v4, %v76_v2  ;;  %727 = vmatprep.mubr.msk.f32.mxu1 %vm78_vm0, %v74_v5  ;;  %720 = vmatprep.mubr.msk.f32.mxu0 %vm78_vm0, %v74_v5  ;;  %v75_v7 = vld [vmem:[#allocation2 + $0x8] sm:$0x3f]  ;;  %v237_v19 = vld [vmem:[#allocation7] sm:$0xff]  ;;  %v238_v20 = vld [vmem:[#allocation7 + $0x8] sm:$0xff]  ;;  %v315_v23 = vshrl.u32 %v314_v22, 7  ;;  %v317_v24 = vand.u32 127, %v314_v22 }
  0x4b   :  { %762 = vmatprep.subr.bf16.mxu1 %v761_v3  ;;  %v765_v21 = vpack.c.bf16 %v238_v20, %v237_v19  ;;  %vm414_vm5 = vcmask 1046528   ;;  %vm410_vm6 = vcmask 56320   ;;  %vm488_vm7 = vcmask 129024  }
  0x4c   :  { %764 = vmatpush3.bf16.msra.mxu1 %v761_v3  ;;  %758 = vmatprep.subr.bf16.mxu0 %v757_v6  ;;  %vm318_vm3 = vcmp.ge.s32.totalorder %v315_v23, %v317_v24 }
  0x4d   :  { %760 = vmatpush3.bf16.msra.mxu0 %v757_v6  ;;  %737 = vmatprep.subr.mxu1 %v885_v8 }
  0x4e   :  { %766 = vmatprep.subr.bf16.mxu0 %v765_v21 }
  0x4f   :  { %728 = vmatmul.mubr.msk.f32.vlgmr.msra.gmra.mrb[0].mxu1 %vm78_vm0, %v75_v7 }
  0x50   :  { %721 = vmatmul.mubr.msk.f32.vlgmr.msra.gmra.mrb[0].mxu0 %vm78_vm0, %v75_v7  ;;  %739 = vmatprep.mubr.msk.f32.mxu1 %vm886_vm1, %v885_v8 }
  0x51   :  { %734 = vmatprep.mubr.msk.f32.mxu0 %vm78_vm0, %v74_v5  ;;  %768 = vmatpush3.bf16.msra.mxu0 %v765_v21 }
  0x52   :  { %742 = vmatprep.subr.mxu0 %v885_v8 }
  0x54   :  { %735 = vmatmul.mubr.msk.f32.vlgmr.msra.gmra.mrb[2].mxu0 %vm78_vm0, %v75_v7 }
  0x55   :  { %744 = vmatprep.mubr.msk.f32.mxu0 %vm886_vm1, %v885_v8 }
 0x122   :  { %v729_v9 = vpop.f32.mrb[0].mxu1 }
 0x123   :  { %v497_v10 = vrot.slane %v729_v9, 7  ;;  %v228_v11 = vpop.f32.mrb[1].mxu1  ;;  %v722_v12 = vpop.f32.mrb[0].mxu0 }
 0x124   :  { %v496_v13 = vrot.slane %v228_v11, 7  ;;  %738 = vmatpush3.xpose.msk.msra.mxu1 %vm78_vm0, %v228_v11  ;;  %v493_v14 = vrot.slane %v722_v12, 7  ;;  %v151_v15 = vpop.f32.mrb[1].mxu0 }
 0x125   :  { %v492_v16 = vrot.slane %v151_v15, 7  ;;  %747 = vmatprep.subr.mxu1 %v885_v8 }
 0x126   :  { %v498_v17 = vsel %vm491_vm2, %v496_v13, %v497_v10 }
 0x127   :  { %740 = vmatmul.mubr.msk.f32.vlgmr.msra.gmra.mrb[2].mxu1 %vm78_vm0, %v151_v15  ;;  %v494_v18 = vsel %vm491_vm2, %v492_v16, %v493_v14  ;;  %v736_v45 = vpop.f32.mrb[2].mxu0 }
 0x128   :  { %748 = vmatpush3.xpose.msk.msra.mxu1 %vm78_vm0, %v498_v17  ;;  %749 = vmatprep.mubr.msk.f32.mxu1 %vm886_vm1, %v885_v8  ;;  %v305_v46 = vpop.f32.mrb[3].mxu0  ;;  %v590_v47 = vrot.slane %v736_v45, 7 }
 0x129   :  { %v589_v48 = vrot.slane %v305_v46, 7  ;;  %743 = vmatpush3.msk.msra.mxu0 %vm414_vm5, %v305_v46 }
 0x12a   :  { %752 = vmatprep.subr.mxu0 %v885_v8 }
 0x12b   :  { %750 = vmatmul.mubr.msk.f32.vlgmr.msra.gmra.mrb[4].mxu1 %vm78_vm0, %v494_v18  ;;  %v591_v49 = vsel %vm491_vm2, %v589_v48, %v590_v47 }
 0x1fa   :  { %v391_v25 = vpop.f32.mrb[2].mxu1 }
 0x1fb   :  { %v395_v26 = vmul.f32 0.25, %v391_v25  ;;  %v741_v27 = vpop.f32.mrb[3].mxu1 }
 0x1fd   :  { %v396_v28 = vsel %vm318_vm3, %v395_v26, -inf }
 0x1fe   :  { %v569_v29 = vpop.f32.mrb[4].mxu1  ;;  %v398_v30 = vsel %vm397_vm4, %v396_v28, -inf }
 0x1ff   :  { %v573_v31 = vmul.f32 0.25, %v569_v29  ;;  %399 = vmax.xlane.f32.xlu0 %v398_v30  ;;  %v751_v32 = vpop.f32.mrb[5].mxu1 }
 0x201   :  { %v574_v33 = vsel %vm318_vm3, %v573_v31, -inf }
 0x202   :  { %v575_v34 = vsel %vm397_vm4, %v574_v33, -inf }
 0x203   :  { %576 = vmax.xlane.f32.xlu0 %v575_v34 }
 0x28c   :  { %v400_v35 = vpop.xlane.xlu0 %399 }
 0x28d   :  { %v401_v36 = vsub.f32 %v396_v28, %v400_v35 }
 0x28f   :  { %v402_v37 = vmul.f32 1.442695, %v401_v36 }
 0x290   :  { %v577_v38 = vpop.xlane.xlu0 %576 }
 0x291   :  { %777 = vpow2.f32 %v402_v37  ;;  %v578_v39 = vsub.f32 %v574_v33, %v577_v38 }
 0x293   :  { %v579_v40 = vmul.f32 1.442695, %v578_v39 }
 0x295   :  { %779 = vpow2.f32 %v579_v40 }
 0x29b   :  { %v778_v41 = vpop.eup %777 }
 0x29c   :  { %v404_v42 = vsel %vm397_vm4, %v778_v41, 0.0 }
 0x29d   :  { %405 = vadd.xlane.f32.xlu1 %v404_v42 }
 0x29f   :  { %v780_v43 = vpop.eup %779 }
 0x2a0   :  { %v581_v44 = vsel %vm397_vm4, %v780_v43, 0.0 }
 0x2a1   :  { %582 = vadd.xlane.f32.xlu1 %v581_v44 }
 0x32a   :  { %v406_v50 = vpop.xlane.xlu1 %405 }
 0x32b   :  { %781 = vrcp.f32 %v406_v50 }
 0x32e   :  { %v583_v51 = vpop.xlane.xlu1 %582 }
 0x32f   :  { %783 = vrcp.f32 %v583_v51 }
 0x335   :  { %v782_v52 = vpop.eup %781 }
 0x336   :  { %v408_v53 = vmul.f32 %v782_v52, %v778_v41 }
 0x338   :  { %409 = vst.msk [vmem:[%s1041_s5] sm:$0x7f] %vm397_vm4, %v408_v53  ;;  %745 = vmatmul.mubr.msk.f32.vlgmr.msra.gmra.mrb[4].mxu0 %vm410_vm6, %v408_v53 }
 0x339   :  { %v784_v54 = vpop.eup %783  ;;  %753 = vmatpush3.msk.msra.mxu0 %vm414_vm5, %v591_v49  ;;  %754 = vmatprep.mubr.msk.f32.mxu0 %vm886_vm1, %v885_v8 }
 0x33a   :  { %v585_v55 = vmul.f32 %v784_v54, %v780_v43 }
 0x33c   :  { %692 = vst.msk [vmem:[%s1041_s5 + $0x8] sm:$0x7f] %vm397_vm4, %v585_v55  ;;  %755 = vmatmul.mubr.msk.f32.vlgmr.msra.gmra.mrb[6].mxu0 %vm410_vm6, %v585_v55 }
 0x40b   :  { %v484_v56 = vpop.f32.mrb[4].mxu0 }
 0x40c   :  { %489 = vst.msk [vmem:[%s1040_s4] sm:$0x7f] %vm488_vm7, %v484_v56  ;;  %v746_v57 = vpop.f32.mrb[5].mxu0 }
 0x40f   :  { %v663_v58 = vpop.f32.mrb[6].mxu0 }
 0x410   :  { %695 = vst.msk [vmem:[%s1040_s4 + $0x8] sm:$0x7f] %vm488_vm7, %v663_v58  ;;  %v756_v59 = vpop.f32.mrb[7].mxu0 }
 0x411   :  { %677 = vsyncpa [#allocation3], 1 }
 0x412   :  { %678 = vsyncpa [#allocation5], 1 }
 0x413   :  { %679 = vsyncpa [#allocation8], 1 }

</bundles_post_ra>
